<compile_context>
chip_gen: v6e
topology: v6e:2x2x1
jax: 0.10.0
libtpu: 0.0.40
codegen_flags: <defaults>
</compile_context>

<pallas_src>
import jax
import jax.numpy as jnp
from jax.experimental import pallas as pl
from jax.experimental.pallas import tpu as pltpu


def _round_up(a, m):
    return ((a + m - 1) // m) * m


def _make_kernel(n_col_blocks):
    """o = x + (x @ W + b); x/W in native dtype, f32 accumulate, f32 bias."""

    def kernel(x_ref, w_ref, b_ref, o_ref):
        x = x_ref[...]                                   # (tm, Hk) native dtype
        fx = jnp.dot(x, w_ref[...],
                     preferred_element_type=jnp.float32)  # (tm, tn) f32 acc
        fx = fx + b_ref[...]                              # b pre-cast to f32
        if n_col_blocks == 1:
            x_res = x                                     # residual = full block
        else:
            tn = o_ref.shape[-1]
            col0 = pl.multiple_of(pl.program_id(1) * tn, tn)
            x_res = x_ref[:, pl.ds(col0, tn)]             # residual slice (VMEM)
        o_ref[...] = (x_res.astype(jnp.float32) + fx).astype(o_ref.dtype)

    return kernel


def residual_linear(x, w, b, *, tm=512, tn=512):
    """x: (B, S, H); w: (H, H); b: (H,).  Returns x + (x @ w + b)."""
    B, S, H = x.shape
    M = B * S
    xdt = x.dtype
    itemsize = jnp.dtype(xdt).itemsize

    # Match operand dtypes for the MXU fast path; bias goes straight to f32.
    w = w.astype(xdt)
    b2 = b.astype(jnp.float32).reshape(1, H)

    # Native sublane tile per dtype: f32 -> 8, bf16 -> 16, int8/fp8 -> 32.
    sub = max(8, 32 // itemsize)
    tm = max(sub, min(_round_up(tm, sub), _round_up(M, sub)))
    grid_m = pl.cdiv(M, tm)

    try:
        vmem_cap = pltpu.get_tpu_info().vmem_capacity_bytes
    except Exception:
        vmem_cap = 64 * 1024 * 1024   # v7x per-TC floor

    # Keep W whole & resident in VMEM when it comfortably fits; otherwise tile
    # the output (N) axis so the per-step W working set is (H, tn).
    resident = (H * H * itemsize) <= (vmem_cap // 3)

    x2d = x.reshape(M, H)
    pad_n = 0
    if resident:
        tn = H                                       # single N block
    else:
        tn = min(_round_up(tn, 128), _round_up(H, 128))
        pad_n = _round_up(H, tn) - H
        if pad_n:   # rare: large hidden size not a multiple of tn
            x2d = jnp.pad(x2d, ((0, 0), (0, pad_n)))
            w = jnp.pad(w, ((0, pad_n), (0, pad_n)))
            b2 = jnp.pad(b2, ((0, 0), (0, pad_n)))
    Hk = H + pad_n
    grid_n = Hk // tn

    # BlockSpecs: x resident across the inner N axis, W/b streamed over N (or
    # resident + single-buffered when grid_n == 1), lane-dense output tiles.
    x_spec = pl.BlockSpec((tm, Hk), lambda i, j: (i, 0))
    if resident:
        w_spec = pl.BlockSpec((Hk, tn), lambda i, j: (0, j),
                              pipeline_mode=pl.Buffered(1))
        b_spec = pl.BlockSpec((1, tn), lambda i, j: (0, j),
                              pipeline_mode=pl.Buffered(1))
    else:
        w_spec = pl.BlockSpec((Hk, tn), lambda i, j: (0, j))
        b_spec = pl.BlockSpec((1, tn), lambda i, j: (0, j))
    o_spec = pl.BlockSpec((tm, tn), lambda i, j: (i, j))

    # Megacore: split the axis whose replicated operand is the smaller stream.
    w_stream = Hk * Hk * itemsize
    x_stream = 2 * M * Hk * itemsize
    if grid_n > 1 and w_stream > x_stream:
        dims = ("arbitrary", "parallel")   # split N: each core reads half of W
    else:
        dims = ("parallel", "arbitrary")   # split M: each core reads half of x

    # VMEM budget: double-buffered x/out, W/b single- or double-buffered,
    # plus headroom for compiler-internal scratch; stay below physical VMEM.
    w_bufs = 1 if resident else 2
    vmem_need = (2 * tm * Hk * itemsize
                 + 2 * tm * tn * itemsize
                 + w_bufs * Hk * tn * itemsize
                 + w_bufs * tn * 4
                 + (4 << 20))
    vmem_limit = int(max(min(vmem_need, vmem_cap - (8 << 20)), 16 << 20))

    cost = pl.CostEstimate(
        flops=2 * M * Hk * Hk,
        transcendentals=0,
        bytes_accessed=(2 * M * Hk * itemsize
                        + (1 if resident else grid_m) * Hk * Hk * itemsize
                        + Hk * 4),
    )

    out2d = pl.pallas_call(
        _make_kernel(grid_n),
        out_shape=jax.ShapeDtypeStruct((M, Hk), xdt),
        grid_spec=pltpu.PrefetchScalarGridSpec(
            num_scalar_prefetch=0,
            grid=(grid_m, grid_n),
            in_specs=[x_spec, w_spec, b_spec],
            out_specs=o_spec,
        ),
        compiler_params=pltpu.CompilerParams(
            dimension_semantics=dims,
            vmem_limit_bytes=vmem_limit,
        ),
        cost_estimate=cost,
    )(x2d, w, b2)

    if pad_n:
        out2d = out2d[:, :H]
    return out2d.reshape(B, S, H)


if __name__ == "__main__":
    B, S, H = 2, 8, 32
    key = jax.random.PRNGKey(0)
    kx, kw, kb = jax.random.split(key, 3)

    x = jax.random.normal(kx, (B, S, H), dtype=jnp.float32)
    # Deterministic "fn" parameters (PyTorch Linear-style uniform init).
    bound = 1.0 / jnp.sqrt(H)
    w = jax.random.uniform(kw, (H, H), minval=-bound, maxval=bound,
                           dtype=jnp.float32)
    b = jax.random.uniform(kb, (H,), minval=-bound, maxval=bound,
                           dtype=jnp.float32)

    out = residual_linear(x, w, b)
    jax.block_until_ready(out)

    # Reference check in plain JAX: x + fn(x)
    ref = x + (jnp.einsum("bsh,hk->bsk", x, w) + b)
    assert jnp.allclose(out, ref, atol=1e-5, rtol=1e-5), "mismatch vs reference"

    print("KERNEL_OK")
</pallas_src>

<mosaic_0001>
module attributes {stable_mosaic.version = 11 : i64} {
  func.func @kernel(%arg0: i32, %arg1: i32, %arg2: memref<16x32xf32, #tpu.memory_space<vmem>>, %arg3: memref<32x32xf32, #tpu.memory_space<vmem>>, %arg4: memref<1x32xf32, #tpu.memory_space<vmem>>, %arg5: memref<16x32xf32, #tpu.memory_space<vmem>>) attributes {dimension_semantics = [#tpu.dimension_semantics<parallel>, #tpu.dimension_semantics<arbitrary>], iteration_bounds = array<i64: 1, 1>, scalar_prefetch = 0 : i64, scratch_operands = 0 : i64, tpu.core_type = #tpu.core_type<tc>, window_params = [{transform_indices = @transform_0, window_bounds = array<i64: 16, 32>}, {pipeline_mode = #tpu.pipeline_mode<synchronous>, transform_indices = @transform_1, window_bounds = array<i64: 32, 32>}, {pipeline_mode = #tpu.pipeline_mode<synchronous>, transform_indices = @transform_2, window_bounds = array<i64: 1, 32>}, {transform_indices = @transform_3, window_bounds = array<i64: 16, 32>}]} {
    %c0 = arith.constant 0 : index
    %c0_0 = arith.constant 0 : index
    %0 = vector.load %arg2[%c0, %c0_0] : memref<16x32xf32, #tpu.memory_space<vmem>>, vector<16x32xf32>
    %c0_1 = arith.constant 0 : index
    %c0_2 = arith.constant 0 : index
    %1 = vector.load %arg3[%c0_1, %c0_2] : memref<32x32xf32, #tpu.memory_space<vmem>>, vector<32x32xf32>
    %cst = arith.constant dense<0.000000e+00> : vector<16x32xf32>
    %2 = tpu.matmul %0, %1, %cst {dimension_numbers = #tpu.dot_dimension_numbers<[1], [0], [0], [1], [0, 0, 1, 1], [], []>} : vector<16x32xf32>, vector<32x32xf32>, vector<16x32xf32> -> vector<16x32xf32>
    %c0_3 = arith.constant 0 : index
    %c0_4 = arith.constant 0 : index
    %3 = vector.load %arg4[%c0_3, %c0_4] : memref<1x32xf32, #tpu.memory_space<vmem>>, vector<1x32xf32>
    %4 = vector.broadcast %3 : vector<1x32xf32> to vector<16x32xf32>
    %5 = arith.addf %2, %4 : vector<16x32xf32>
    %6 = arith.addf %0, %5 : vector<16x32xf32>
    %c0_5 = arith.constant 0 : index
    %c0_6 = arith.constant 0 : index
    %7 = vector.load %arg5[%c0_5, %c0_6] : memref<16x32xf32, #tpu.memory_space<vmem>>, vector<16x32xf32>
    tpu.vector_store %arg5[%c0_5, %c0_6], %6 {strides = array<i32>} : memref<16x32xf32, #tpu.memory_space<vmem>>, vector<16x32xf32>,
    return
  }
  func.func @transform_0(%arg0: i32, %arg1: i32) -> (i32, i32) {
    %c0_i32 = arith.constant 0 : i32
    %c0_i32_0 = arith.constant 0 : i32
    return %arg0, %c0_i32 : i32, i32
  }
  func.func @transform_1(%arg0: i32, %arg1: i32) -> (i32, i32) {
    %c0_i32 = arith.constant 0 : i32
    %c0_i32_0 = arith.constant 0 : i32
    return %c0_i32, %arg1 : i32, i32
  }
  func.func @transform_2(%arg0: i32, %arg1: i32) -> (i32, i32) {
    %c0_i32 = arith.constant 0 : i32
    %c0_i32_0 = arith.constant 0 : i32
    return %c0_i32, %arg1 : i32, i32
  }
  func.func @transform_3(%arg0: i32, %arg1: i32) -> (i32, i32) {
    %c0_i32 = arith.constant 0 : i32
    return %arg0, %arg1 : i32, i32
  }
}

</mosaic_0001>

<bundles_post_ra>
// kernel: tpu_custom_call.1
= control target key start
LH: loop header
LB: loop body
LE: loop exit
PB: predicated region body
PF: predicated region fallthrough
CT: control target
= control target key end

     0   :  { %8 = vsyncpa [#allocation3], 0  ;;  %s301_s0 = inlined_call_operand.hbm [shape: f32[16,32], index: 0, kind: input, shape index: {}]   ;;  %s302_s1 = inlined_call_operand.hbm [shape: f32[32,32], index: 1, kind: input, shape index: {}]   ;;  %s303_s2 = inlined_call_operand.vmem [shape: f32[1,32], index: 2, kind: input, shape index: {}]   ;;  %s304_s3 = inlined_call_operand.hbm [shape: f32[16,32], index: 3, kind: output, shape index: {}]  }
   0x1   :  { %9 = vsyncpa [#allocation6], 0 }
   0x2   :  { %10 = vsyncpa [#allocation4], 0  ;;  %s251_s12 = smov [#allocation2]  }
   0x3   :  { %s16_s13 = sshll.u32 %s251_s12, 4  ;;  %s17_s13 = int_to_ptr.vmem [resolvable:$true] %s16_s13 }
   0x4   :  { %s193_s14 = scalar_lea.vmem %s17_s13, 256  ;;  %p198_p1 = scmp.lt.s32.totalorder %s17_s13, %s17_s13 }
   0x5   :  { %p194_p0 = scmp.ne.s32.totalorder %s17_s13, %s193_s14  ;;  %p199_p2 = scmp.lt.s32.totalorder %s193_s14, %s193_s14 }
   0x7   :  { %p200_p3 = por %p199_p2, %p198_p1 }
   0x9   :  { %p201_p4 = pnand %p200_p3, %p194_p0 }
   0xb   :  { %204 = shalt.err (!%p201_p4)
}
   0xc   :  { %s252_s15 = smov 128   ;;  %s253_s16 = smov 8  }
   0xd   :  { %22 = dma.hbm_to_vmem [thread:$0]  %s301_s0, 256, %s17_s13, [#allocation3], %s252_s15, %s252_s15, %s253_s16  }
   0xe   :  { %s254_s19 = smov [#allocation5]  }
   0xf   :  { %s28_s20 = sshll.u32 %s254_s19, 4  ;;  %s29_s20 = int_to_ptr.vmem [resolvable:$true] %s28_s20 }
  0x10   :  { %s213_s21 = scalar_lea.vmem %s29_s20, 512  ;;  %p218_p6 = scmp.lt.s32.totalorder %s29_s20, %s29_s20 }
  0x11   :  { %p214_p5 = scmp.ne.s32.totalorder %s29_s20, %s213_s21  ;;  %p219_p7 = scmp.lt.s32.totalorder %s213_s21, %s213_s21 }
  0x13   :  { %p220_p8 = por %p219_p7, %p218_p6 }
  0x15   :  { %p221_p9 = pnand %p220_p8, %p214_p5 }
  0x17   :  { %224 = shalt.err (!%p221_p9)
}
  0x18   :  { %34 = dma.hbm_to_vmem [thread:$0]  %s302_s1, 512, %s29_s20, [#allocation6], %s252_s15, %s252_s15, %s253_s16  }
  0x19   :  { %245 = dma.done.wait [#allocation3], 256  }
  0x1a   :  { %246 = vsyncadd [#allocation3], 4294967040 }
  0x1b   :  { %247 = dma.done.wait [#allocation6], 512  }
  0x1c   :  { %248 = vsyncadd [#allocation6], 4294966784  ;;  %vm56_vm0 = vcmask 261120   ;;  %v48_v0 = vld [vmem:[#allocation5 + $0x18] sm:$0xff]  ;;  %v47_v1 = vld [vmem:[#allocation5 + $0x10] sm:$0xff]  ;;  %s255_s24 = smov [#allocation7]  }
  0x1d   :  { %169 = vmatprep.subr.mxu0 %v48_v0  ;;  %v43_v2 = vld [vmem:[#allocation2] sm:$0xff]  ;;  %v46_v3 = vld [vmem:[#allocation5 + $0x8] sm:$0xff]  ;;  %v45_v4 = vld [vmem:[#allocation5] sm:$0xff]  ;;  %s147_s25 = sshll.u32 %s255_s24, 4  ;;  %s148_s25 = int_to_ptr.vmem [resolvable:$true] %s147_s25 }
  0x1e   :  { %170 = vmatpush3.msra.mxu0 %v48_v0  ;;  %177 = vmatprep.mubr.msk.f32.mxu0 %vm56_vm0, %v43_v2  ;;  %v44_v5 = vld [vmem:[#allocation2 + $0x8] sm:$0xff]  ;;  %v160_v6 = vld [vmem:[%s303_s2] ss:$0 sm:$0xff]  ;;  %s225_s26 = scalar_lea.vmem %s148_s25, 256  ;;  %p230_p11 = scmp.lt.s32.totalorder %s148_s25, %s148_s25 }
  0x1f   :  { %171 = vmatprep.subr.mxu0 %v47_v1  ;;  %p226_p10 = scmp.ne.s32.totalorder %s148_s25, %s225_s26  ;;  %p231_p12 = scmp.lt.s32.totalorder %s225_s26, %s225_s26 }
  0x20   :  { %172 = vmatpush3.msra.mxu0 %v47_v1 }
  0x21   :  { %173 = vmatprep.subr.mxu0 %v46_v3  ;;  %p232_p13 = por %p231_p12, %p230_p11 }
  0x22   :  { %174 = vmatpush3.msra.mxu0 %v46_v3 }
  0x23   :  { %175 = vmatprep.subr.mxu0 %v45_v4  ;;  %p233_p0 = pnand %p232_p13, %p226_p10 }
  0x24   :  { %176 = vmatpush3.msra.mxu0 %v45_v4 }
  0x25   :  { %178 = vmatmul.mubr.msk.f32.vlgmr.msra.gmra.mxu0 %vm56_vm0, %v44_v5 }
  0xe5   :  { %v179_v7 = vpop.f32.mrf.mxu0 }
  0xe6   :  { %v135_v8 = vadd.f32 %v179_v7, %v160_v6 }
  0xe7   :  { %v129_v9 = vpop.f32.mrf.mxu0 }
  0xe8   :  { %v139_v10 = vadd.f32 %v135_v8, %v44_v5  ;;  %v130_v11 = vadd.f32 %v160_v6, %v129_v9 }
  0xea   :  { %141 = vst.msk [vmem:[#allocation7 + $0x8] sm:$0xff] %vm56_vm0, %v139_v10  ;;  %v138_v12 = vadd.f32 %v130_v11, %v43_v2 }
  0xec   :  { %140 = vst.msk [vmem:[#allocation7] sm:$0xff] %vm56_vm0, %v138_v12 }
  0xed   :  { %236 = shalt.err (!%p233_p0)
}
  0xee   :  { %153 = dma.vmem_to_hbm [thread:$0]  %s148_s25, 256, %s304_s3, [#allocation4], %s252_s15, %s252_s15, %s253_s16  }
  0xef   :  { %249 = dma.done.wait [#allocation4], 256  }
  0xf0   :  { %250 = vsyncadd [#allocation4], 4294967040 }
  0xf1   :  { %157 = vsyncpa [#allocation3], 1 }
  0xf2   :  { %158 = vsyncpa [#allocation6], 1 }
  0xf3   :  { %159 = vsyncpa [#allocation4], 1 }

</bundles_post_ra>
